<compile_context>
chip_gen: v5e
topology: v5e:2x2
jax: 0.10.0
libtpu: 0.0.40
codegen_flags: <defaults>
</compile_context>

<pallas_src>
import jax
import jax.numpy as jnp
from jax.experimental import pallas as pl
from jax.experimental.pallas import tpu as pltpu


def _round_up(x, m):
    return ((x + m - 1) // m) * m


def clg_loss_kernel(pred_ref, truth_ref, out_ref):
    # ReLU both operands (matches self.relu in the torch module), cast in-register.
    p = jnp.maximum(pred_ref[...].astype(jnp.float32), 0.0)
    t = jnp.maximum(truth_ref[...].astype(jnp.float32), 0.0)

    # Binary cross entropy, element-wise, with PyTorch's clamp(log, min=-100).
    log_p = jnp.maximum(jnp.log(p), -100.0)
    log_1mp = jnp.maximum(jnp.log(1.0 - p), -100.0)
    loss_elems = -(t * log_p + (1.0 - t) * log_1mp)

    # Per-block partial sum (single reduce per large block, hidden under the DMA).
    out_ref[0, 0] = jnp.sum(loss_elems)


def clg_loss(pred, truth, *, lanes=512, max_block_rows=1024):
    """pred, truth: (B, ...) arrays with pred values in [0, 1] (BCE requirement)."""
    batch = pred.shape[0]
    p2 = pred.reshape(batch, -1)
    t2 = truth.reshape(batch, -1)
    if p2.shape != t2.shape:
        raise Exception("pred shape:", p2.shape, "truth.shape:", t2.shape)

    n_total = p2.shape[0] * p2.shape[1]

    # Flatten to a sublane/lane-dense 2D slab; the mean is order-agnostic.
    flat_p = p2.reshape(-1)
    flat_t = t2.reshape(-1)

    rows = -(-n_total // lanes)                       # ceil(n / lanes)
    block_rows = min(max_block_rows, _round_up(rows, 8))
    rows_pad = _round_up(rows, block_rows)
    n_pad = rows_pad * lanes
    if n_pad != n_total:
        # Zero padding contributes exactly 0 to the clamped-BCE sum.
        flat_p = jnp.pad(flat_p, (0, n_pad - n_total))
        flat_t = jnp.pad(flat_t, (0, n_pad - n_total))

    p = flat_p.reshape(rows_pad, lanes)
    t = flat_t.reshape(rows_pad, lanes)
    num_blocks = rows_pad // block_rows

    partials = pl.pallas_call(
        clg_loss_kernel,
        out_shape=jax.ShapeDtypeStruct((num_blocks, 1), jnp.float32),
        grid_spec=pltpu.PrefetchScalarGridSpec(
            num_scalar_prefetch=0,
            grid=(num_blocks,),
            in_specs=[
                pl.BlockSpec((block_rows, lanes), lambda j: (j, 0)),
                pl.BlockSpec((block_rows, lanes), lambda j: (j, 0)),
            ],
            out_specs=pl.BlockSpec((1, 1), lambda j: (j, 0),
                                   memory_space=pltpu.SMEM),
        ),
        compiler_params=pltpu.CompilerParams(
            dimension_semantics=("parallel",)),
    )(p, t)

    return jnp.sum(partials) / jnp.float32(n_total)


def clg_loss_ref(pred, truth):
    """Pure-JAX reference for sanity checking."""
    batch = pred.shape[0]
    p = jnp.maximum(pred.reshape(batch, -1).astype(jnp.float32), 0.0)
    t = jnp.maximum(truth.reshape(batch, -1).astype(jnp.float32), 0.0)
    log_p = jnp.maximum(jnp.log(p), -100.0)
    log_1mp = jnp.maximum(jnp.log(1.0 - p), -100.0)
    return jnp.mean(-(t * log_p + (1.0 - t) * log_1mp))


if __name__ == "__main__":
    key = jax.random.PRNGKey(0)
    k1, k2 = jax.random.split(key)
    # BCE requires pred in [0, 1]; use uniform inputs (as PyTorch would error otherwise).
    pred = jax.random.uniform(k1, (2, 4, 16, 16), dtype=jnp.float32)
    truth = jax.random.uniform(k2, (2, 4, 16, 16), dtype=jnp.float32)

    loss = clg_loss(pred, truth)
    jax.block_until_ready(loss)

    ref = clg_loss_ref(pred, truth)
    assert jnp.allclose(loss, ref, rtol=1e-5, atol=1e-5), (loss, ref)
    print("KERNEL_OK")
</pallas_src>

<mosaic_0001>
module attributes {stable_mosaic.version = 11 : i64} {
  func.func @clg_loss_kernel(%arg0: i32, %arg1: memref<8x512xf32, #tpu.memory_space<vmem>>, %arg2: memref<8x512xf32, #tpu.memory_space<vmem>>, %arg3: memref<1x1xf32, #tpu.memory_space<smem>>) attributes {dimension_semantics = [#tpu.dimension_semantics<parallel>], iteration_bounds = array<i64: 1>, scalar_prefetch = 0 : i64, scratch_operands = 0 : i64, tpu.core_type = #tpu.core_type<tc>, window_params = [{transform_indices = @transform_0, window_bounds = array<i64: 8, 512>}, {transform_indices = @transform_1, window_bounds = array<i64: 8, 512>}, {transform_indices = @transform_2, window_bounds = array<i64: 1, 1>}]} {
    %c0 = arith.constant 0 : index
    %c0_0 = arith.constant 0 : index
    %0 = vector.load %arg1[%c0, %c0_0] : memref<8x512xf32, #tpu.memory_space<vmem>>, vector<8x512xf32>
    %cst = arith.constant 0.000000e+00 : f32
    %1 = vector.broadcast %cst : f32 to vector<8x512xf32>
    %2 = arith.maximumf %0, %1 : vector<8x512xf32>
    %c0_1 = arith.constant 0 : index
    %c0_2 = arith.constant 0 : index
    %3 = vector.load %arg2[%c0_1, %c0_2] : memref<8x512xf32, #tpu.memory_space<vmem>>, vector<8x512xf32>
    %cst_3 = arith.constant 0.000000e+00 : f32
    %4 = vector.broadcast %cst_3 : f32 to vector<8x512xf32>
    %5 = arith.maximumf %3, %4 : vector<8x512xf32>
    %6 = math.log %2 : vector<8x512xf32>
    %cst_4 = arith.constant -1.000000e+02 : f32
    %7 = vector.broadcast %cst_4 : f32 to vector<8x512xf32>
    %8 = arith.maximumf %6, %7 : vector<8x512xf32>
    %cst_5 = arith.constant 1.000000e+00 : f32
    %9 = vector.broadcast %cst_5 : f32 to vector<8x512xf32>
    %10 = arith.subf %9, %2 : vector<8x512xf32>
    %11 = math.log %10 : vector<8x512xf32>
    %cst_6 = arith.constant -1.000000e+02 : f32
    %12 = vector.broadcast %cst_6 : f32 to vector<8x512xf32>
    %13 = arith.maximumf %11, %12 : vector<8x512xf32>
    %14 = arith.mulf %5, %8 : vector<8x512xf32>
    %cst_7 = arith.constant 1.000000e+00 : f32
    %15 = vector.broadcast %cst_7 : f32 to vector<8x512xf32>
    %16 = arith.subf %15, %5 : vector<8x512xf32>
    %17 = arith.mulf %16, %13 : vector<8x512xf32>
    %18 = arith.addf %14, %17 : vector<8x512xf32>
    %cst_8 = arith.constant 0.000000e+00 : f32
    %19 = vector.broadcast %cst_8 : f32 to vector<8x512xf32>
    %20 = arith.subf %19, %18 : vector<8x512xf32>
    %21 = vector.shape_cast %20 : vector<8x512xf32> to vector<1x8x512xf32>
    %cst_9 = arith.constant dense<0.000000e+00> : vector<1xf32>
    %22 = vector.multi_reduction <add>, %21, %cst_9 [1, 2] : vector<1x8x512xf32> to vector<1xf32>
    %23 = vector.shape_cast %22 : vector<1xf32> to vector<1x1x1xf32>
    %24 = vector.extract %23[0, 0, 0] : f32 from vector<1x1x1xf32>
    %c0_10 = arith.constant 0 : index
    %c0_11 = arith.constant 0 : index
    %25 = memref.load %arg3[%c0_10, %c0_11] : memref<1x1xf32, #tpu.memory_space<smem>>
    memref.store %24, %arg3[%c0_10, %c0_11] : memref<1x1xf32, #tpu.memory_space<smem>>
    return
  }
  func.func @transform_0(%arg0: i32) -> (i32, i32) {
    %c0_i32 = arith.constant 0 : i32
    %c0_i32_0 = arith.constant 0 : i32
    return %arg0, %c0_i32 : i32, i32
  }
  func.func @transform_1(%arg0: i32) -> (i32, i32) {
    %c0_i32 = arith.constant 0 : i32
    %c0_i32_0 = arith.constant 0 : i32
    return %arg0, %c0_i32 : i32, i32
  }
  func.func @transform_2(%arg0: i32) -> (i32, i32) {
    %c0_i32 = arith.constant 0 : i32
    %c0_i32_0 = arith.constant 0 : i32
    return %arg0, %c0_i32 : i32, i32
  }
}

</mosaic_0001>

<bundles_post_ra>
// kernel: tpu_custom_call.1
= control target key start
LH: loop header
LB: loop body
LE: loop exit
PB: predicated region body
PF: predicated region fallthrough
CT: control target
= control target key end

     0   :  { %7 = vsyncpa [#allocation3], 0  ;;  %s249_s0 = inlined_call_operand.hbm [shape: f32[8,512], index: 0, kind: input, shape index: {}]   ;;  %s250_s1 = inlined_call_operand.hbm [shape: f32[8,512], index: 1, kind: input, shape index: {}]   ;;  %s251_s2 = inlined_call_operand.hbm [shape: f32[1,1], index: 2, kind: output, shape index: {}]  }
   0x1   :  { %8 = vsyncpa [#allocation6], 0 }
   0x2   :  { %9 = vsyncpa [#allocation4], 0  ;;  %s15_s11 = sshll.u32 %s249_s0, 4  ;;  %s222_s12 = smov [#allocation2]   ;;  %s16_s11 = int_to_ptr.hbm [resolvable:$true] %s15_s11 }
   0x3   :  { %s17_s13 = sshll.u32 %s222_s12, 4  ;;  %s26_s16 = sshll.u32 %s250_s1, 4  ;;  %s18_s13 = int_to_ptr.vmem [resolvable:$true] %s17_s13  ;;  %s27_s16 = int_to_ptr.hbm [resolvable:$true] %s26_s16 }
   0x4   :  { %20 = dma.hbm_to_vmem [thread:$0]  %s16_s11, 512, %s18_s13, [#allocation3]  }
   0x5   :  { %s223_s17 = smov [#allocation5]  }
   0x6   :  { %s28_s18 = sshll.u32 %s223_s17, 4  ;;  %s29_s18 = int_to_ptr.vmem [resolvable:$true] %s28_s18 }
   0x7   :  { %31 = dma.hbm_to_vmem [thread:$0]  %s27_s16, 512, %s29_s18, [#allocation6]  }
   0x8   :  { %216 = dma.done.wait [#allocation3], 512  }
   0x9   :  { %217 = vsyncadd [#allocation3], 4294966784 }
   0xa   :  { %218 = dma.done.wait [#allocation6], 512  }
   0xb   :  { %219 = vsyncadd [#allocation6], 4294966784  ;;  %v40_v0 = vld [vmem:[#allocation2] sm:$0xff]  ;;  %v41_v1 = vld [vmem:[#allocation2 + $0x8] sm:$0xff]  ;;  %s123_s19 = sshll.u32 %s251_s2, 4  ;;  %s224_s21 = smov [#allocation7]   ;;  %s124_s19 = int_to_ptr.hbm [resolvable:$true] %s123_s19 }
   0xc   :  { %v42_v2 = vld [vmem:[#allocation2 + $0x10] sm:$0xff]  ;;  %v43_v3 = vld [vmem:[#allocation2 + $0x18] sm:$0xff]  ;;  %v44_v4 = vmax.f32 %v40_v0, 0.0  ;;  %v45_v5 = vmax.f32 %v41_v1, 0.0  ;;  %v48_v12 = vld [vmem:[#allocation5] sm:$0xff] }
   0xd   :  { %v46_v6 = vmax.f32 %v42_v2, 0.0  ;;  %v47_v7 = vmax.f32 %v43_v3, 0.0  ;;  %v49_v13 = vld [vmem:[#allocation5 + $0x8] sm:$0xff]  ;;  %v50_v15 = vld [vmem:[#allocation5 + $0x10] sm:$0xff]  ;;  %v51_v17 = vld [vmem:[#allocation5 + $0x18] sm:$0xff]  ;;  %v52_v18 = vmax.f32 %v48_v12, 0.0 }
   0xe   :  { %140 = vlog2.f32 %v44_v4  ;;  %v68_v8 = vsub.f32 1.0, %v44_v4  ;;  %v69_v9 = vsub.f32 1.0, %v45_v5  ;;  %v53_v21 = vmax.f32 %v49_v13, 0.0 }
   0xf   :  { %142 = vlog2.f32 %v45_v5  ;;  %v70_v10 = vsub.f32 1.0, %v46_v6  ;;  %v71_v11 = vsub.f32 1.0, %v47_v7  ;;  %v54_v24 = vmax.f32 %v50_v15, 0.0 }
  0x10   :  { %144 = vlog2.f32 %v46_v6  ;;  %v55_v28 = vmax.f32 %v51_v17, 0.0  ;;  %v88_v34 = vsub.f32 1.0, %v52_v18  ;;  %v89_v38 = vsub.f32 1.0, %v53_v21 }
  0x11   :  { %146 = vlog2.f32 %v47_v7  ;;  %v90_v43 = vsub.f32 1.0, %v54_v24 }
  0x12   :  { %148 = vlog2.f32 %v68_v8  ;;  %v91_v47 = vsub.f32 1.0, %v55_v28 }
  0x13   :  { %150 = vlog2.f32 %v69_v9 }
  0x14   :  { %v141_v14 = vpop.eup %140  ;;  %152 = vlog2.f32 %v70_v10 }
  0x15   :  { %v143_v16 = vpop.eup %142  ;;  %v57_v19 = vmul.f32 0.6931472, %v141_v14  ;;  %154 = vlog2.f32 %v71_v11 }
  0x16   :  { %v145_v20 = vpop.eup %144  ;;  %v59_v22 = vmul.f32 0.6931472, %v143_v16 }
  0x17   :  { %v147_v23 = vpop.eup %146  ;;  %v61_v25 = vmul.f32 0.6931472, %v145_v20  ;;  %v64_v26 = vmax.f32 %v57_v19, -100.0 }
  0x18   :  { %v149_v27 = vpop.eup %148  ;;  %v63_v29 = vmul.f32 0.6931472, %v147_v23  ;;  %v65_v30 = vmax.f32 %v59_v22, -100.0 }
  0x19   :  { %v151_v31 = vpop.eup %150  ;;  %v66_v32 = vmax.f32 %v61_v25, -100.0  ;;  %v73_v33 = vmul.f32 0.6931472, %v149_v27  ;;  %v84_v42 = vmul.f32 %v64_v26, %v52_v18 }
  0x1a   :  { %v153_v35 = vpop.eup %152  ;;  %v67_v36 = vmax.f32 %v63_v29, -100.0  ;;  %v75_v37 = vmul.f32 0.6931472, %v151_v31  ;;  %v85_v46 = vmul.f32 %v65_v30, %v53_v21 }
  0x1b   :  { %v155_v39 = vpop.eup %154  ;;  %v77_v40 = vmul.f32 0.6931472, %v153_v35  ;;  %v80_v41 = vmax.f32 %v73_v33, -100.0  ;;  %v86_v49 = vmul.f32 %v66_v32, %v54_v24 }
  0x1c   :  { %v79_v44 = vmul.f32 0.6931472, %v155_v39  ;;  %v81_v45 = vmax.f32 %v75_v37, -100.0  ;;  %v87_v52 = vmul.f32 %v67_v36, %v55_v28 }
  0x1d   :  { %v82_v48 = vmax.f32 %v77_v40, -100.0  ;;  %v92_v50 = vmul.f32 %v88_v34, %v80_v41 }
  0x1e   :  { %v83_v51 = vmax.f32 %v79_v44, -100.0  ;;  %v93_v53 = vmul.f32 %v89_v38, %v81_v45 }
  0x1f   :  { %v94_v54 = vmul.f32 %v90_v43, %v82_v48  ;;  %v96_v55 = vadd.f32 %v92_v50, %v84_v42 }
  0x20   :  { %v95_v56 = vmul.f32 %v91_v47, %v83_v51  ;;  %v97_v57 = vadd.f32 %v93_v53, %v85_v46 }
  0x21   :  { %v98_v58 = vadd.f32 %v94_v54, %v86_v49  ;;  %v100_v59 = vsub.f32 0.0, %v96_v55 }
  0x22   :  { %v99_v60 = vadd.f32 %v95_v56, %v87_v52  ;;  %v101_v61 = vsub.f32 0.0, %v97_v57 }
  0x23   :  { %v102_v62 = vsub.f32 0.0, %v98_v58 }
  0x24   :  { %v103_v63 = vsub.f32 0.0, %v99_v60  ;;  %v104_v0 = vadd.f32 %v101_v61, %v100_v59 }
  0x26   :  { %v105_v1 = vadd.f32 %v104_v0, %v102_v62 }
  0x28   :  { %v106_v2 = vadd.f32 %v105_v1, %v103_v63 }
  0x2a   :  { %107 = vadd.xlane.f32.xlu0 %v106_v2 }
  0x9d   :  { %v108_v3 = vpop.xlane.xlu0 %107 }
  0x9e   :  { %v109_v4 = vrot.slane %v108_v3, 4 }
  0xa0   :  { %v110_v5 = vadd.f32 %v109_v4, %v108_v3 }
  0xa2   :  { %v111_v6 = vrot.slane %v110_v5, 2 }
  0xa4   :  { %v112_v7 = vadd.f32 %v111_v6, %v110_v5 }
  0xa6   :  { %v113_v8 = vrot.slane %v112_v7, 1 }
  0xa8   :  { %v114_v9 = vadd.f32 %v113_v8, %v112_v7 }
  0xaa   :  { %135 = vpush %v114_v9 }
  0xdb   :  { %s136_s20 = spop %135 }
  0xdc   :  { %117 = sst [smem:[#allocation7]] %s136_s20 }
  0xdd   :  { %126 = dma.smem_to_hbm %s224_s21, 16, %s124_s19, [#allocation4]  }
  0xde   :  { %220 = dma.done.wait [#allocation4], 16  }
  0xdf   :  { %221 = vsyncadd [#allocation4], 4294967280 }
  0xe0   :  { %131 = sfence }
  0xe1   :  { %132 = vsyncpa [#allocation3], 1 }
  0xe2   :  { %133 = vsyncpa [#allocation6], 1 }
  0xe3   :  { %134 = vsyncpa [#allocation4], 1 }

</bundles_post_ra>
